<compile_context>
chip_gen: v7x
topology: tpu7x:2x2x1
jax: 0.10.0
libtpu: 0.0.40
codegen_flags: <defaults>
</compile_context>

<pallas_src>
import math
import functools
import numpy as np
import jax
import jax.numpy as jnp
from jax import lax
from jax.experimental import pallas as pl
from jax.experimental.pallas import tpu as pltpu


def coattention_kernel(q_ref, o_ref,                 # (TB, Lq, E), (TB, Lo, E)
                       qlen_ref, olen_ref,           # (TB, 1, 1) int32
                       Mw_ref, Mb_ref,               # (E, E), (1, E)
                       Wh_ref,                       # (4, E): [wc_summary, wc_orig, wm, ws]
                       bias_ref,                     # (3,) f32 in SMEM: [bc, bm, bs]
                       out_q_ref, out_o_ref,         # (3, TB, Lq), (3, TB, Lo)
                       *, use_bf16=False):
    TB, Lq, E = q_ref.shape
    Lo = o_ref.shape[1]

    q = q_ref[...]                                   # (TB, Lq, E) f32
    o = o_ref[...]                                   # (TB, Lo, E) f32

    mm_dtype = jnp.bfloat16 if use_bf16 else jnp.float32

    # ---- projection: one big (TB*Lq, E) @ (E, E) MXU matmul ----
    q2d = q.reshape(TB * Lq, E)
    proj2d = jnp.dot(q2d.astype(mm_dtype), Mw_ref[...].astype(mm_dtype),
                     preferred_element_type=jnp.float32) + Mb_ref[...]
    proj = proj2d.reshape(TB, Lq, E)

    # ---- affinity: batched matmul contracting E against E (no explicit transpose) ----
    aff = jnp.einsum("bqe,boe->bqo", proj.astype(mm_dtype), o.astype(mm_dtype),
                     preferred_element_type=jnp.float32)          # (TB, Lq, Lo)

    # ---- masked mean pooling + softmax (transpose-free) ----
    qlen = qlen_ref[...].reshape(TB, 1)                           # (TB, 1) int32
    olen = olen_ref[...].reshape(TB, 1)

    q_pos = lax.broadcasted_iota(jnp.int32, (TB, Lq), 1)
    o_pos = lax.broadcasted_iota(jnp.int32, (TB, Lo), 1)

    # masking rows (query positions) before the mean over options == masking the row means
    qw_logits = jnp.where(q_pos < qlen, jnp.mean(aff, axis=2), -jnp.inf)   # (TB, Lq)
    # masking columns (option positions) before the mean over queries == masking column means
    ow_logits = jnp.where(o_pos < olen, jnp.mean(aff, axis=1), -jnp.inf)   # (TB, Lo)

    def softmax_last(x):
        m = jnp.max(x, axis=-1, keepdims=True)
        e = jnp.exp(x - m)
        return e / jnp.sum(e, axis=-1, keepdims=True)

    qw = softmax_last(qw_logits)                                  # (TB, Lq)
    ow = softmax_last(ow_logits)                                  # (TB, Lo)

    # ---- fused heads (VPU multiply + lane reduce; summary = w ⊙ x) ----
    Wh = Wh_ref[...]                                              # (4, E)
    wcs = Wh[0:1, :][None, :, :]                                  # (1, 1, E)
    wcx = Wh[1:2, :][None, :, :]
    wm = Wh[2:3, :][None, :, :]
    ws = Wh[3:4, :][None, :, :]
    bc = bias_ref[0]
    bm = bias_ref[1]
    bs = bias_ref[2]

    def heads(x, w):
        # x: (TB, L, E), w: (TB, L) attention weights; summary = w[..., None] * x
        a = jnp.sum(x * wcs, axis=-1)                             # x · wc_summary  -> (TB, L)
        b_ = jnp.sum(x * wcx, axis=-1)                            # x · wc_orig
        d = jnp.sum((x * x) * wm, axis=-1)                        # (x*x) · wm
        e = jnp.sum(x * ws, axis=-1)                              # x · ws
        c_out = jnp.maximum(w * a + b_ + bc, 0.0)                 # fcc
        m_out = jnp.maximum(w * d + bm, 0.0)                      # fcm
        s_out = jnp.maximum((w - 1.0) * e + bs, 0.0)              # fcs
        return c_out, m_out, s_out

    qc, qm, qs = heads(q, qw)
    oc, om, os_ = heads(o, ow)

    # write each head into its own (TB, L) slab of the lane-dense output
    out_q_ref[0] = qc
    out_q_ref[1] = qm
    out_q_ref[2] = qs
    out_o_ref[0] = oc
    out_o_ref[1] = om
    out_o_ref[2] = os_


def coattention(query, query_lens, option, option_lens, params,
                *, batch_tile=None, use_bf16_matmul=False):
    B, Lq, E = query.shape
    Lo = option.shape[1]

    # Batch tile: TB == (padded) B or a multiple of 8 so the (TB, L) output slabs satisfy
    # the (8, 128) sublane constraint.
    if batch_tile is None:
        TB = B if B <= 8 else 8
    else:
        TB = batch_tile
    n_steps = -(-B // TB)
    Bp = n_steps * TB
    if Bp != B:
        pad = Bp - B
        query = jnp.pad(query, ((0, pad), (0, 0), (0, 0)))
        option = jnp.pad(option, ((0, pad), (0, 0), (0, 0)))
        query_lens = jnp.pad(query_lens, ((0, pad),), constant_values=1)
        option_lens = jnp.pad(option_lens, ((0, pad),), constant_values=1)

    qlens = query_lens.astype(jnp.int32).reshape(Bp, 1, 1)
    olens = option_lens.astype(jnp.int32).reshape(Bp, 1, 1)

    # pack head weights: rows = [wc_summary, wc_orig, wm, ws], each length E
    wc = params["wc"]
    Wh = jnp.stack([wc[:E, 0], wc[E:, 0], params["wm"][:, 0], params["ws"][:, 0]],
                   axis=0).astype(jnp.float32)                     # (4, E)
    bias = jnp.concatenate([params["bc"].reshape(1), params["bm"].reshape(1),
                            params["bs"].reshape(1)]).astype(jnp.float32)  # (3,)

    kernel = functools.partial(coattention_kernel, use_bf16=use_bf16_matmul)

    grid_spec = pltpu.PrefetchScalarGridSpec(
        num_scalar_prefetch=0,
        grid=(n_steps,),
        in_specs=[
            pl.BlockSpec((TB, Lq, E), lambda g: (g, 0, 0)),        # query
            pl.BlockSpec((TB, Lo, E), lambda g: (g, 0, 0)),        # option
            pl.BlockSpec((TB, 1, 1), lambda g: (g, 0, 0)),         # query lens
            pl.BlockSpec((TB, 1, 1), lambda g: (g, 0, 0)),         # option lens
            pl.BlockSpec((E, E), lambda g: (0, 0)),                # M weight
            pl.BlockSpec((1, E), lambda g: (0, 0)),                # M bias
            pl.BlockSpec((4, E), lambda g: (0, 0)),                # packed head weights
            pl.BlockSpec(memory_space=pltpu.MemorySpace.SMEM),     # head biases (scalars)
        ],
        out_specs=[
            pl.BlockSpec((3, TB, Lq), lambda g: (0, g, 0)),
            pl.BlockSpec((3, TB, Lo), lambda g: (0, g, 0)),
        ],
    )

    out_q, out_o = pl.pallas_call(
        kernel,
        grid_spec=grid_spec,
        out_shape=(
            jax.ShapeDtypeStruct((3, Bp, Lq), jnp.float32),
            jax.ShapeDtypeStruct((3, Bp, Lo), jnp.float32),
        ),
        compiler_params=pltpu.CompilerParams(
            dimension_semantics=("parallel",),
            vmem_limit_bytes=32 * 1024 * 1024,
        ),
    )(query, option, qlens, olens, params["Mw"], params["Mb"], Wh, bias)

    # recover the module's (B, L, 3) layout with a cheap transpose in plain JAX
    out_q = jnp.transpose(out_q, (1, 2, 0))[:B]
    out_o = jnp.transpose(out_o, (1, 2, 0))[:B]
    return out_q, out_o


def coattention_reference(query, query_lens, option, option_lens, params):
    """Pure-JAX reference mirroring the PyTorch forward (pooling='mean')."""
    B, Lq, E = query.shape
    Lo = option.shape[1]
    proj = query @ params["Mw"] + params["Mb"]
    aff = jnp.einsum("bqe,boe->bqo", proj, option)
    mask_q = jnp.arange(Lq)[None, :] < query_lens[:, None]
    mask_o = jnp.arange(Lo)[None, :] < option_lens[:, None]
    maq = jnp.where(mask_q[:, :, None], aff, -jnp.inf)
    mao = jnp.where(mask_o[:, None, :], aff, -jnp.inf)
    qw = jax.nn.softmax(maq.mean(2), axis=-1)
    summary_q = qw[:, :, None] * query
    ow = jax.nn.softmax(mao.mean(1), axis=-1)
    summary_o = ow[:, :, None] * option

    def heads(s, x):
        c = jax.nn.relu(jnp.concatenate([s, x], -1) @ params["wc"] + params["bc"])
        m = jax.nn.relu((s * x) @ params["wm"] + params["bm"])
        t = jax.nn.relu((s - x) @ params["ws"] + params["bs"])
        return jnp.concatenate([c, m, t], -1)

    return heads(summary_q, query), heads(summary_o, option)


if __name__ == "__main__":
    B, Lq, Lo, E = 2, 8, 8, 32

    key = jax.random.PRNGKey(0)
    keys = jax.random.split(key, 10)

    query = jax.random.normal(keys[0], (B, Lq, E), dtype=jnp.float32)
    option = jax.random.normal(keys[1], (B, Lo, E), dtype=jnp.float32)
    query_lens = jnp.array([6, 8], dtype=jnp.int32)
    option_lens = jnp.array([8, 5], dtype=jnp.int32)

    scale = 1.0 / math.sqrt(E)
    params = {
        "Mw": jax.random.normal(keys[2], (E, E), jnp.float32) * scale,
        "Mb": jax.random.normal(keys[3], (1, E), jnp.float32) * 0.1,
        "wc": jax.random.normal(keys[4], (2 * E, 1), jnp.float32) * scale,
        "bc": jax.random.normal(keys[5], (1, 1), jnp.float32) * 0.1,
        "wm": jax.random.normal(keys[6], (E, 1), jnp.float32) * scale,
        "bm": jax.random.normal(keys[7], (1, 1), jnp.float32) * 0.1,
        "ws": jax.random.normal(keys[8], (E, 1), jnp.float32) * scale,
        "bs": jax.random.normal(keys[9], (1, 1), jnp.float32) * 0.1,
    }

    out_q, out_o = coattention(query, query_lens, option, option_lens, params)
    out_q, out_o = jax.block_until_ready((out_q, out_o))

    ref_q, ref_o = coattention_reference(query, query_lens, option, option_lens, params)
    np.testing.assert_allclose(np.asarray(out_q), np.asarray(ref_q), rtol=1e-5, atol=1e-5)
    np.testing.assert_allclose(np.asarray(out_o), np.asarray(ref_o), rtol=1e-5, atol=1e-5)

    print("KERNEL_OK")
</pallas_src>

<mosaic_0001>
module attributes {stable_mosaic.version = 11 : i64} {
  func.func @coattention_kernel(%arg0: i32, %arg1: memref<2x8x32xf32, #tpu.memory_space<vmem>>, %arg2: memref<2x8x32xf32, #tpu.memory_space<vmem>>, %arg3: memref<2x1x1xi32, #tpu.memory_space<vmem>>, %arg4: memref<2x1x1xi32, #tpu.memory_space<vmem>>, %arg5: memref<32x32xf32, #tpu.memory_space<vmem>>, %arg6: memref<1x32xf32, #tpu.memory_space<vmem>>, %arg7: memref<4x32xf32, #tpu.memory_space<vmem>>, %arg8: memref<3xf32, #tpu.memory_space<smem>>, %arg9: memref<3x2x8xf32, #tpu.memory_space<vmem>>, %arg10: memref<3x2x8xf32, #tpu.memory_space<vmem>>) attributes {dimension_semantics = [#tpu.dimension_semantics<parallel>], iteration_bounds = array<i64: 1>, scalar_prefetch = 0 : i64, scratch_operands = 0 : i64, tpu.core_type = #tpu.core_type<tc>, window_params = [{transform_indices = @transform_0, window_bounds = array<i64: 2, 8, 32>}, {transform_indices = @transform_1, window_bounds = array<i64: 2, 8, 32>}, {transform_indices = @transform_2, window_bounds = array<i64: 2, 1, 1>}, {transform_indices = @transform_3, window_bounds = array<i64: 2, 1, 1>}, {pipeline_mode = #tpu.pipeline_mode<synchronous>, transform_indices = @transform_4, window_bounds = array<i64: 32, 32>}, {pipeline_mode = #tpu.pipeline_mode<synchronous>, transform_indices = @transform_5, window_bounds = array<i64: 1, 32>}, {pipeline_mode = #tpu.pipeline_mode<synchronous>, transform_indices = @transform_6, window_bounds = array<i64: 4, 32>}, {transform_indices = @transform_7, window_bounds = array<i64: 3>}, {transform_indices = @transform_8, window_bounds = array<i64: 3, 2, 8>}, {transform_indices = @transform_9, window_bounds = array<i64: 3, 2, 8>}]} {
    %c0 = arith.constant 0 : index
    %c0_0 = arith.constant 0 : index
    %c0_1 = arith.constant 0 : index
    %0 = vector.load %arg1[%c0, %c0_0, %c0_1] : memref<2x8x32xf32, #tpu.memory_space<vmem>>, vector<2x8x32xf32>
    %c0_2 = arith.constant 0 : index
    %c0_3 = arith.constant 0 : index
    %c0_4 = arith.constant 0 : index
    %1 = vector.load %arg2[%c0_2, %c0_3, %c0_4] : memref<2x8x32xf32, #tpu.memory_space<vmem>>, vector<2x8x32xf32>
    %2 = vector.shape_cast %0 : vector<2x8x32xf32> to vector<16x32xf32>
    %c0_5 = arith.constant 0 : index
    %c0_6 = arith.constant 0 : index
    %3 = vector.load %arg5[%c0_5, %c0_6] : memref<32x32xf32, #tpu.memory_space<vmem>>, vector<32x32xf32>
    %cst = arith.constant dense<0.000000e+00> : vector<16x32xf32>
    %4 = tpu.matmul %2, %3, %cst {dimension_numbers = #tpu.dot_dimension_numbers<[1], [0], [0], [1], [0, 0, 1, 1], [], []>} : vector<16x32xf32>, vector<32x32xf32>, vector<16x32xf32> -> vector<16x32xf32>
    %c0_7 = arith.constant 0 : index
    %c0_8 = arith.constant 0 : index
    %5 = vector.load %arg6[%c0_7, %c0_8] : memref<1x32xf32, #tpu.memory_space<vmem>>, vector<1x32xf32>
    %6 = vector.broadcast %5 : vector<1x32xf32> to vector<16x32xf32>
    %7 = arith.addf %4, %6 : vector<16x32xf32>
    %8 = vector.shape_cast %7 : vector<16x32xf32> to vector<2x8x32xf32>
    "tpu.trace_start"() <{level = 10 : i32, message = "bqe,boe->bqo"}> : () -> ()
    %cst_9 = arith.constant dense<0.000000e+00> : vector<2x8x8xf32>
    %9 = tpu.matmul %8, %1, %cst_9 {dimension_numbers = #tpu.dot_dimension_numbers<[2], [2], [1], [1], [0, 0, 0, 1, 1, 1], [0], [0]>} : vector<2x8x32xf32>, vector<2x8x32xf32>, vector<2x8x8xf32> -> vector<2x8x8xf32>
    "tpu.trace_stop"() : () -> ()
    %c0_10 = arith.constant 0 : index
    %c0_11 = arith.constant 0 : index
    %c0_12 = arith.constant 0 : index
    %10 = vector.load %arg3[%c0_10, %c0_11, %c0_12] : memref<2x1x1xi32, #tpu.memory_space<vmem>>, vector<2x1x1xi32>
    %11 = vector.shape_cast %10 : vector<2x1x1xi32> to vector<2x1xi32>
    %c0_13 = arith.constant 0 : index
    %c0_14 = arith.constant 0 : index
    %c0_15 = arith.constant 0 : index
    %12 = vector.load %arg4[%c0_13, %c0_14, %c0_15] : memref<2x1x1xi32, #tpu.memory_space<vmem>>, vector<2x1x1xi32>
    %13 = vector.shape_cast %12 : vector<2x1x1xi32> to vector<2x1xi32>
    %14 = tpu.iota {dimensions = array<i32: 1>} : vector<2x8xi32>
    %15 = tpu.iota {dimensions = array<i32: 1>} : vector<2x8xi32>
    %16 = vector.broadcast %11 : vector<2x1xi32> to vector<2x8xi32>
    %17 = arith.cmpi slt, %14, %16 : vector<2x8xi32>
    %cst_16 = arith.constant dense<0.000000e+00> : vector<2x8xf32>
    %18 = vector.multi_reduction <add>, %9, %cst_16 [2] : vector<2x8x8xf32> to vector<2x8xf32>
    %cst_17 = arith.constant 8.000000e+00 : f32
    %19 = vector.broadcast %cst_17 : f32 to vector<2x8xf32>
    %20 = arith.divf %18, %19 : vector<2x8xf32>
    %cst_18 = arith.constant 0xFF800000 : f32
    %21 = vector.broadcast %cst_18 : f32 to vector<2x8xf32>
    %22 = arith.select %17, %20, %21 : vector<2x8xi1>, vector<2x8xf32>
    %23 = vector.broadcast %13 : vector<2x1xi32> to vector<2x8xi32>
    %24 = arith.cmpi slt, %15, %23 : vector<2x8xi32>
    %cst_19 = arith.constant dense<0.000000e+00> : vector<2x8xf32>
    %25 = vector.multi_reduction <add>, %9, %cst_19 [1] : vector<2x8x8xf32> to vector<2x8xf32>
    %cst_20 = arith.constant 8.000000e+00 : f32
    %26 = vector.broadcast %cst_20 : f32 to vector<2x8xf32>
    %27 = arith.divf %25, %26 : vector<2x8xf32>
    %cst_21 = arith.constant 0xFF800000 : f32
    %28 = vector.broadcast %cst_21 : f32 to vector<2x8xf32>
    %29 = arith.select %24, %27, %28 : vector<2x8xi1>, vector<2x8xf32>
    %cst_22 = arith.constant dense<0xFF800000> : vector<2xf32>
    %30 = vector.multi_reduction <maximumf>, %22, %cst_22 [1] : vector<2x8xf32> to vector<2xf32>
    %31 = vector.shape_cast %30 : vector<2xf32> to vector<2x1xf32>
    %32 = vector.broadcast %31 : vector<2x1xf32> to vector<2x8xf32>
    %33 = arith.subf %22, %32 : vector<2x8xf32>
    %34 = math.exp %33 : vector<2x8xf32>
    %cst_23 = arith.constant dense<0.000000e+00> : vector<2xf32>
    %35 = vector.multi_reduction <add>, %34, %cst_23 [1] : vector<2x8xf32> to vector<2xf32>
    %36 = vector.shape_cast %35 : vector<2xf32> to vector<2x1xf32>
    %37 = vector.broadcast %36 : vector<2x1xf32> to vector<2x8xf32>
    %38 = arith.divf %34, %37 : vector<2x8xf32>
    %cst_24 = arith.constant dense<0xFF800000> : vector<2xf32>
    %39 = vector.multi_reduction <maximumf>, %29, %cst_24 [1] : vector<2x8xf32> to vector<2xf32>
    %40 = vector.shape_cast %39 : vector<2xf32> to vector<2x1xf32>
    %41 = vector.broadcast %40 : vector<2x1xf32> to vector<2x8xf32>
    %42 = arith.subf %29, %41 : vector<2x8xf32>
    %43 = math.exp %42 : vector<2x8xf32>
    %cst_25 = arith.constant dense<0.000000e+00> : vector<2xf32>
    %44 = vector.multi_reduction <add>, %43, %cst_25 [1] : vector<2x8xf32> to vector<2xf32>
    %45 = vector.shape_cast %44 : vector<2xf32> to vector<2x1xf32>
    %46 = vector.broadcast %45 : vector<2x1xf32> to vector<2x8xf32>
    %47 = arith.divf %43, %46 : vector<2x8xf32>
    %c0_26 = arith.constant 0 : index
    %c0_27 = arith.constant 0 : index
    %48 = vector.load %arg7[%c0_26, %c0_27] : memref<4x32xf32, #tpu.memory_space<vmem>>, vector<4x32xf32>
    %49 = vector.extract_strided_slice %48 {offsets = [0, 0], sizes = [1, 32], strides = [1, 1]} : vector<4x32xf32> to vector<1x32xf32>
    %50 = vector.shape_cast %49 : vector<1x32xf32> to vector<1x1x32xf32>
    %51 = vector.extract_strided_slice %48 {offsets = [1, 0], sizes = [1, 32], strides = [1, 1]} : vector<4x32xf32> to vector<1x32xf32>
    %52 = vector.shape_cast %51 : vector<1x32xf32> to vector<1x1x32xf32>
    %53 = vector.extract_strided_slice %48 {offsets = [2, 0], sizes = [1, 32], strides = [1, 1]} : vector<4x32xf32> to vector<1x32xf32>
    %54 = vector.shape_cast %53 : vector<1x32xf32> to vector<1x1x32xf32>
    %55 = vector.extract_strided_slice %48 {offsets = [3, 0], sizes = [1, 32], strides = [1, 1]} : vector<4x32xf32> to vector<1x32xf32>
    %56 = vector.shape_cast %55 : vector<1x32xf32> to vector<1x1x32xf32>
    %c0_28 = arith.constant 0 : index
    %57 = memref.load %arg8[%c0_28] : memref<3xf32, #tpu.memory_space<smem>>
    %c1 = arith.constant 1 : index
    %58 = memref.load %arg8[%c1] : memref<3xf32, #tpu.memory_space<smem>>
    %c2 = arith.constant 2 : index
    %59 = memref.load %arg8[%c2] : memref<3xf32, #tpu.memory_space<smem>>
    %60 = vector.broadcast %50 : vector<1x1x32xf32> to vector<2x8x32xf32>
    %61 = arith.mulf %0, %60 : vector<2x8x32xf32>
    %cst_29 = arith.constant dense<0.000000e+00> : vector<2x8xf32>
    %62 = vector.multi_reduction <add>, %61, %cst_29 [2] : vector<2x8x32xf32> to vector<2x8xf32>
    %63 = vector.broadcast %52 : vector<1x1x32xf32> to vector<2x8x32xf32>
    %64 = arith.mulf %0, %63 : vector<2x8x32xf32>
    %cst_30 = arith.constant dense<0.000000e+00> : vector<2x8xf32>
    %65 = vector.multi_reduction <add>, %64, %cst_30 [2] : vector<2x8x32xf32> to vector<2x8xf32>
    %66 = arith.mulf %0, %0 : vector<2x8x32xf32>
    %67 = vector.broadcast %54 : vector<1x1x32xf32> to vector<2x8x32xf32>
    %68 = arith.mulf %66, %67 : vector<2x8x32xf32>
    %cst_31 = arith.constant dense<0.000000e+00> : vector<2x8xf32>
    %69 = vector.multi_reduction <add>, %68, %cst_31 [2] : vector<2x8x32xf32> to vector<2x8xf32>
    %70 = vector.broadcast %56 : vector<1x1x32xf32> to vector<2x8x32xf32>
    %71 = arith.mulf %0, %70 : vector<2x8x32xf32>
    %cst_32 = arith.constant dense<0.000000e+00> : vector<2x8xf32>
    %72 = vector.multi_reduction <add>, %71, %cst_32 [2] : vector<2x8x32xf32> to vector<2x8xf32>
    %73 = arith.mulf %38, %62 : vector<2x8xf32>
    %74 = arith.addf %73, %65 : vector<2x8xf32>
    %75 = vector.broadcast %57 : f32 to vector<2x8xf32>
    %76 = arith.addf %74, %75 : vector<2x8xf32>
    %cst_33 = arith.constant 0.000000e+00 : f32
    %77 = vector.broadcast %cst_33 : f32 to vector<2x8xf32>
    %78 = arith.maximumf %76, %77 : vector<2x8xf32>
    %79 = arith.mulf %38, %69 : vector<2x8xf32>
    %80 = vector.broadcast %58 : f32 to vector<2x8xf32>
    %81 = arith.addf %79, %80 : vector<2x8xf32>
    %cst_34 = arith.constant 0.000000e+00 : f32
    %82 = vector.broadcast %cst_34 : f32 to vector<2x8xf32>
    %83 = arith.maximumf %81, %82 : vector<2x8xf32>
    %cst_35 = arith.constant 1.000000e+00 : f32
    %84 = vector.broadcast %cst_35 : f32 to vector<2x8xf32>
    %85 = arith.subf %38, %84 : vector<2x8xf32>
    %86 = arith.mulf %85, %72 : vector<2x8xf32>
    %87 = vector.broadcast %59 : f32 to vector<2x8xf32>
    %88 = arith.addf %86, %87 : vector<2x8xf32>
    %cst_36 = arith.constant 0.000000e+00 : f32
    %89 = vector.broadcast %cst_36 : f32 to vector<2x8xf32>
    %90 = arith.maximumf %88, %89 : vector<2x8xf32>
    %91 = vector.broadcast %50 : vector<1x1x32xf32> to vector<2x8x32xf32>
    %92 = arith.mulf %1, %91 : vector<2x8x32xf32>
    %cst_37 = arith.constant dense<0.000000e+00> : vector<2x8xf32>
    %93 = vector.multi_reduction <add>, %92, %cst_37 [2] : vector<2x8x32xf32> to vector<2x8xf32>
    %94 = vector.broadcast %52 : vector<1x1x32xf32> to vector<2x8x32xf32>
    %95 = arith.mulf %1, %94 : vector<2x8x32xf32>
    %cst_38 = arith.constant dense<0.000000e+00> : vector<2x8xf32>
    %96 = vector.multi_reduction <add>, %95, %cst_38 [2] : vector<2x8x32xf32> to vector<2x8xf32>
    %97 = arith.mulf %1, %1 : vector<2x8x32xf32>
    %98 = vector.broadcast %54 : vector<1x1x32xf32> to vector<2x8x32xf32>
    %99 = arith.mulf %97, %98 : vector<2x8x32xf32>
    %cst_39 = arith.constant dense<0.000000e+00> : vector<2x8xf32>
    %100 = vector.multi_reduction <add>, %99, %cst_39 [2] : vector<2x8x32xf32> to vector<2x8xf32>
    %101 = vector.broadcast %56 : vector<1x1x32xf32> to vector<2x8x32xf32>
    %102 = arith.mulf %1, %101 : vector<2x8x32xf32>
    %cst_40 = arith.constant dense<0.000000e+00> : vector<2x8xf32>
    %103 = vector.multi_reduction <add>, %102, %cst_40 [2] : vector<2x8x32xf32> to vector<2x8xf32>
    %104 = arith.mulf %47, %93 : vector<2x8xf32>
    %105 = arith.addf %104, %96 : vector<2x8xf32>
    %106 = vector.broadcast %57 : f32 to vector<2x8xf32>
    %107 = arith.addf %105, %106 : vector<2x8xf32>
    %cst_41 = arith.constant 0.000000e+00 : f32
    %108 = vector.broadcast %cst_41 : f32 to vector<2x8xf32>
    %109 = arith.maximumf %107, %108 : vector<2x8xf32>
    %110 = arith.mulf %47, %100 : vector<2x8xf32>
    %111 = vector.broadcast %58 : f32 to vector<2x8xf32>
    %112 = arith.addf %110, %111 : vector<2x8xf32>
    %cst_42 = arith.constant 0.000000e+00 : f32
    %113 = vector.broadcast %cst_42 : f32 to vector<2x8xf32>
    %114 = arith.maximumf %112, %113 : vector<2x8xf32>
    %cst_43 = arith.constant 1.000000e+00 : f32
    %115 = vector.broadcast %cst_43 : f32 to vector<2x8xf32>
    %116 = arith.subf %47, %115 : vector<2x8xf32>
    %117 = arith.mulf %116, %103 : vector<2x8xf32>
    %118 = vector.broadcast %59 : f32 to vector<2x8xf32>
    %119 = arith.addf %117, %118 : vector<2x8xf32>
    %cst_44 = arith.constant 0.000000e+00 : f32
    %120 = vector.broadcast %cst_44 : f32 to vector<2x8xf32>
    %121 = arith.maximumf %119, %120 : vector<2x8xf32>
    %c0_45 = arith.constant 0 : index
    %c0_46 = arith.constant 0 : index
    %c0_47 = arith.constant 0 : index
    %122 = vector.load %arg9[%c0_45, %c0_46, %c0_47] : memref<3x2x8xf32, #tpu.memory_space<vmem>>, vector<1x2x8xf32>
    %123 = vector.shape_cast %122 : vector<1x2x8xf32> to vector<2x8xf32>
    %124 = vector.shape_cast %78 : vector<2x8xf32> to vector<1x2x8xf32>
    tpu.vector_store %arg9[%c0_45, %c0_46, %c0_47], %124 {strides = array<i32>} : memref<3x2x8xf32, #tpu.memory_space<vmem>>, vector<1x2x8xf32>,
    %c1_48 = arith.constant 1 : index
    %c0_49 = arith.constant 0 : index
    %c0_50 = arith.constant 0 : index
    %125 = vector.load %arg9[%c1_48, %c0_49, %c0_50] : memref<3x2x8xf32, #tpu.memory_space<vmem>>, vector<1x2x8xf32>
    %126 = vector.shape_cast %125 : vector<1x2x8xf32> to vector<2x8xf32>
    %127 = vector.shape_cast %83 : vector<2x8xf32> to vector<1x2x8xf32>
    tpu.vector_store %arg9[%c1_48, %c0_49, %c0_50], %127 {strides = array<i32>} : memref<3x2x8xf32, #tpu.memory_space<vmem>>, vector<1x2x8xf32>,
    %c2_51 = arith.constant 2 : index
    %c0_52 = arith.constant 0 : index
    %c0_53 = arith.constant 0 : index
    %128 = vector.load %arg9[%c2_51, %c0_52, %c0_53] : memref<3x2x8xf32, #tpu.memory_space<vmem>>, vector<1x2x8xf32>
    %129 = vector.shape_cast %128 : vector<1x2x8xf32> to vector<2x8xf32>
    %130 = vector.shape_cast %90 : vector<2x8xf32> to vector<1x2x8xf32>
    tpu.vector_store %arg9[%c2_51, %c0_52, %c0_53], %130 {strides = array<i32>} : memref<3x2x8xf32, #tpu.memory_space<vmem>>, vector<1x2x8xf32>,
    %c0_54 = arith.constant 0 : index
    %c0_55 = arith.constant 0 : index
    %c0_56 = arith.constant 0 : index
    %131 = vector.load %arg10[%c0_54, %c0_55, %c0_56] : memref<3x2x8xf32, #tpu.memory_space<vmem>>, vector<1x2x8xf32>
    %132 = vector.shape_cast %131 : vector<1x2x8xf32> to vector<2x8xf32>
    %133 = vector.shape_cast %109 : vector<2x8xf32> to vector<1x2x8xf32>
    tpu.vector_store %arg10[%c0_54, %c0_55, %c0_56], %133 {strides = array<i32>} : memref<3x2x8xf32, #tpu.memory_space<vmem>>, vector<1x2x8xf32>,
    %c1_57 = arith.constant 1 : index
    %c0_58 = arith.constant 0 : index
    %c0_59 = arith.constant 0 : index
    %134 = vector.load %arg10[%c1_57, %c0_58, %c0_59] : memref<3x2x8xf32, #tpu.memory_space<vmem>>, vector<1x2x8xf32>
    %135 = vector.shape_cast %134 : vector<1x2x8xf32> to vector<2x8xf32>
    %136 = vector.shape_cast %114 : vector<2x8xf32> to vector<1x2x8xf32>
    tpu.vector_store %arg10[%c1_57, %c0_58, %c0_59], %136 {strides = array<i32>} : memref<3x2x8xf32, #tpu.memory_space<vmem>>, vector<1x2x8xf32>,
    %c2_60 = arith.constant 2 : index
    %c0_61 = arith.constant 0 : index
    %c0_62 = arith.constant 0 : index
    %137 = vector.load %arg10[%c2_60, %c0_61, %c0_62] : memref<3x2x8xf32, #tpu.memory_space<vmem>>, vector<1x2x8xf32>
    %138 = vector.shape_cast %137 : vector<1x2x8xf32> to vector<2x8xf32>
    %139 = vector.shape_cast %121 : vector<2x8xf32> to vector<1x2x8xf32>
    tpu.vector_store %arg10[%c2_60, %c0_61, %c0_62], %139 {strides = array<i32>} : memref<3x2x8xf32, #tpu.memory_space<vmem>>, vector<1x2x8xf32>,
    return
  }
  func.func @transform_0(%arg0: i32) -> (i32, i32, i32) {
    %c0_i32 = arith.constant 0 : i32
    %c0_i32_0 = arith.constant 0 : i32
    %c0_i32_1 = arith.constant 0 : i32
    return %arg0, %c0_i32, %c0_i32_0 : i32, i32, i32
  }
  func.func @transform_1(%arg0: i32) -> (i32, i32, i32) {
    %c0_i32 = arith.constant 0 : i32
    %c0_i32_0 = arith.constant 0 : i32
    %c0_i32_1 = arith.constant 0 : i32
    return %arg0, %c0_i32, %c0_i32_0 : i32, i32, i32
  }
  func.func @transform_2(%arg0: i32) -> (i32, i32, i32) {
    %c0_i32 = arith.constant 0 : i32
    %c0_i32_0 = arith.constant 0 : i32
    %c0_i32_1 = arith.constant 0 : i32
    return %arg0, %c0_i32, %c0_i32_0 : i32, i32, i32
  }
  func.func @transform_3(%arg0: i32) -> (i32, i32, i32) {
    %c0_i32 = arith.constant 0 : i32
    %c0_i32_0 = arith.constant 0 : i32
    %c0_i32_1 = arith.constant 0 : i32
    return %arg0, %c0_i32, %c0_i32_0 : i32, i32, i32
  }
  func.func @transform_4(%arg0: i32) -> (i32, i32) {
    %c0_i32 = arith.constant 0 : i32
    %c0_i32_0 = arith.constant 0 : i32
    %c0_i32_1 = arith.constant 0 : i32
    return %c0_i32, %c0_i32_0 : i32, i32
  }
  func.func @transform_5(%arg0: i32) -> (i32, i32) {
    %c0_i32 = arith.constant 0 : i32
    %c0_i32_0 = arith.constant 0 : i32
    %c0_i32_1 = arith.constant 0 : i32
    return %c0_i32, %c0_i32_0 : i32, i32
  }
  func.func @transform_6(%arg0: i32) -> (i32, i32) {
    %c0_i32 = arith.constant 0 : i32
    %c0_i32_0 = arith.constant 0 : i32
    %c0_i32_1 = arith.constant 0 : i32
    return %c0_i32, %c0_i32_0 : i32, i32
  }
  func.func @transform_7(%arg0: i32) -> i32 {
    %c0_i32 = arith.constant 0 : i32
    %c0_i32_0 = arith.constant 0 : i32
    return %c0_i32 : i32
  }
  func.func @transform_8(%arg0: i32) -> (i32, i32, i32) {
    %c0_i32 = arith.constant 0 : i32
    %c0_i32_0 = arith.constant 0 : i32
    %c0_i32_1 = arith.constant 0 : i32
    return %c0_i32, %arg0, %c0_i32_0 : i32, i32, i32
  }
  func.func @transform_9(%arg0: i32) -> (i32, i32, i32) {
    %c0_i32 = arith.constant 0 : i32
    %c0_i32_0 = arith.constant 0 : i32
    %c0_i32_1 = arith.constant 0 : i32
    return %c0_i32, %arg0, %c0_i32_0 : i32, i32, i32
  }
}

</mosaic_0001>

<bundles_post_ra>
// kernel: tpu_custom_call.1
= control target key start
LH: loop header
LB: loop body
LE: loop exit
PB: predicated region body
PF: predicated region fallthrough
CT: control target
= control target key end

     0   :  { %15 = vsyncpa [#allocation3], 0  ;;  %s1218_s0 = inlined_call_operand.hbm [shape: f32[2,8,32], index: 0, kind: input, shape index: {}]   ;;  %s1219_s1 = inlined_call_operand.hbm [shape: f32[2,8,32], index: 1, kind: input, shape index: {}]   ;;  %s1220_s2 = inlined_call_operand.vmem [shape: s32[2,1,1], index: 2, kind: input, shape index: {}]   ;;  %s1221_s3 = inlined_call_operand.vmem [shape: s32[2,1,1], index: 3, kind: input, shape index: {}]   ;;  %s1222_s4 = inlined_call_operand.hbm [shape: f32[32,32], index: 4, kind: input, shape index: {}]   ;;  %s1223_s5 = inlined_call_operand.vmem [shape: f32[1,32], index: 5, kind: input, shape index: {}]   ;;  %s1224_s6 = inlined_call_operand.vmem [shape: f32[4,32], index: 6, kind: input, shape index: {}]   ;;  %s1225_s7 = inlined_call_operand.vmem [shape: f32[3], index: 7, kind: input, shape index: {}]   ;;  %s1226_s8 = inlined_call_operand.hbm [shape: f32[3,2,8], index: 8, kind: output, shape index: {0}]   ;;  %s1227_s9 = inlined_call_operand.hbm [shape: f32[3,2,8], index: 9, kind: output, shape index: {1}]  }
   0x1   :  { %16 = vsyncpa [#allocation7], 0 }
   0x2   :  { %17 = vsyncpa [#allocation5], 0 }
   0x3   :  { %18 = vsyncpa [#allocation4], 0 }
   0x4   :  { %19 = vsyncpa [#allocation12], 0  ;;  %s928_s30 = smov [#allocation6]   ;;  %s929_s11 = smov [#allocation2]  }
   0x5   :  { %s37_s10 = sshll.u32 %s928_s30, 4  ;;  %s25_s12 = sshll.u32 %s929_s11, 4  ;;  %s38_s10 = int_to_ptr.vmem [resolvable:$true] %s37_s10  ;;  %s992_s12 = int_to_ptr.vmem [resolvable:$true] %s25_s12 }
   0x6   :  { %s796_s15 = scalar_lea.hbm %s1219_s1, 256 }
   0x7   :  { %p797_p0 = scmp.ne.s32.totalorder %s1219_s1, %s796_s15  ;;  %p800_p1 = scmp.lt.u32.totalorder %s796_s15, %s1219_s1 }
   0x9   :  { %p802_p2 = pnand %p800_p1, %p797_p0 }
   0xb   :  { %805 = shalt.err (!%p802_p2)
}
   0xc   :  { %s806_s20 = scalar_lea.vmem %s38_s10, 256  ;;  %p811_p4 = scmp.lt.s32.totalorder %s38_s10, %s38_s10 }
   0xd   :  { %p807_p3 = scmp.ne.s32.totalorder %s38_s10, %s806_s20  ;;  %p812_p5 = scmp.lt.s32.totalorder %s806_s20, %s806_s20 }
   0xf   :  { %p813_p6 = por %p812_p5, %p811_p4 }
  0x11   :  { %p814_p7 = pnand %p813_p6, %p807_p3 }
  0x13   :  { %817 = shalt.err (!%p814_p7)
}
  0x14   :  { %s930_s21 = smov 128   ;;  %s931_s22 = smov 8  }
  0x15   :  { %43 = dma.hbm_to_vmem [thread:$0]  %s1219_s1, 256, %s38_s10, [#allocation7], %s930_s21, %s930_s21, %s931_s22  }
  0x16   :  { %s818_s27 = scalar_lea.hbm %s1218_s0, 256 }
  0x17   :  { %p819_p8 = scmp.ne.s32.totalorder %s1218_s0, %s818_s27  ;;  %p822_p9 = scmp.lt.u32.totalorder %s818_s27, %s1218_s0 }
  0x19   :  { %p824_p10 = pnand %p822_p9, %p819_p8 }
  0x1b   :  { %827 = shalt.err (!%p824_p10)
}
  0x1c   :  { %s828_s13 = scalar_lea.vmem %s992_s12, 256  ;;  %p833_p12 = scmp.lt.s32.totalorder %s992_s12, %s992_s12 }
  0x1d   :  { %p829_p11 = scmp.ne.s32.totalorder %s992_s12, %s828_s13  ;;  %p834_p13 = scmp.lt.s32.totalorder %s828_s13, %s828_s13 }
  0x1f   :  { %p835_p0 = por %p834_p13, %p833_p12 }
  0x21   :  { %p836_p1 = pnand %p835_p0, %p829_p11 }
  0x23   :  { %839 = shalt.err (!%p836_p1)
}
  0x24   :  { %31 = dma.hbm_to_vmem [thread:$0]  %s1218_s0, 256, %s992_s12, [#allocation3], %s930_s21, %s930_s21, %s931_s22  }
  0x25   :  { %s70_s16 = sshll.u32 %s1225_s7, 4  ;;  %s932_s17 = smov [#allocation8]   ;;  %s71_s16 = int_to_ptr.vmem [resolvable:$true] %s70_s16 }
  0x26   :  { %s53_s18 = sshll.u32 %s932_s17, 4  ;;  %s840_s23 = scalar_lea.hbm %s1222_s4, 512  ;;  %s54_s18 = int_to_ptr.vmem [resolvable:$true] %s53_s18 }
  0x27   :  { %p841_p2 = scmp.ne.s32.totalorder %s1222_s4, %s840_s23  ;;  %p844_p3 = scmp.lt.u32.totalorder %s840_s23, %s1222_s4 }
  0x29   :  { %p846_p4 = pnand %p844_p3, %p841_p2 }
  0x2b   :  { %849 = shalt.err (!%p846_p4)
}
  0x2c   :  { %s850_s0 = scalar_lea.vmem %s54_s18, 512  ;;  %p855_p6 = scmp.lt.s32.totalorder %s54_s18, %s54_s18 }
  0x2d   :  { %p851_p5 = scmp.ne.s32.totalorder %s54_s18, %s850_s0  ;;  %p856_p7 = scmp.lt.s32.totalorder %s850_s0, %s850_s0 }
  0x2f   :  { %p857_p8 = por %p856_p7, %p855_p6 }
  0x31   :  { %p858_p9 = pnand %p857_p8, %p851_p5 }
  0x33   :  { %861 = shalt.err (!%p858_p9)
}
  0x34   :  { %59 = dma.hbm_to_vmem [thread:$0]  %s1222_s4, 512, %s54_s18, [#allocation7], %s930_s21, %s930_s21, %s931_s22  }
  0x35   :  { %s862_s28 = scalar_lea.vmem %s71_s16, 16  ;;  %p867_p11 = scmp.lt.s32.totalorder %s71_s16, %s71_s16 }
  0x36   :  { %p863_p10 = scmp.ne.s32.totalorder %s71_s16, %s862_s28  ;;  %p868_p12 = scmp.lt.s32.totalorder %s862_s28, %s862_s28 }
  0x38   :  { %p869_p13 = por %p868_p12, %p867_p11 }
  0x3a   :  { %p870_p0 = pnand %p869_p13, %p863_p10 }
  0x3c   :  { %873 = shalt.err (!%p870_p0)
}
  0x3d   :  { %s933_s29 = smov [#allocation9]  }
  0x3e   :  { %73 = dma.vmem_to_smem %s71_s16, 16, %s933_s29, [#allocation5]  }
  0x3f   :  { %918 = dma.done.wait [#allocation3], 256  }
  0x40   :  { %919 = vsyncadd [#allocation3], 4294967040 }
  0x41   :  { %920 = dma.done.wait [#allocation7], 768  }
  0x42   :  { %921 = vsyncadd [#allocation7], 4294966528 }
  0x43   :  { %922 = dma.done.wait [#allocation5], 16  }
  0x44   :  { %923 = vsyncadd [#allocation5], 4294967280 }
  0x45   :  { %86 = sfence }
  0x46   :  { %v91_v0 = vld [vmem:[#allocation8] sm:$0xff]  ;;  %v92_v1 = vld [vmem:[#allocation8 + $0x8] sm:$0xff]  ;;  %v93_v2 = vld [vmem:[#allocation8 + $0x10] sm:$0xff]  ;;  %vm102_vm0 = vcmask 261120   ;;  %v934_v6 = vmov 0.0   ;;  %vm935_vm1 = vmmov 0   ;;  %v340_v42 = vlaneseq }
  0x47   :  { %v764_v3 = vpack.c.bf16 %v92_v1, %v91_v0  ;;  %v94_v4 = vld [vmem:[#allocation8 + $0x18] sm:$0xff]  ;;  %v1047_v5 = vld [vmem:[#allocation2] sm:$0xff]  ;;  %754 = vmatprep.subr.mxu1 %v934_v6  ;;  %v1051_v8 = vld [vmem:[#allocation2 + $0x8] sm:$0xff]  ;;  %756 = vmatprep.mubr.msk.f32.mxu1 %vm935_vm1, %v934_v6  ;;  %v936_v16 = vmov 0   ;;  %vm372_vm2 = vcmask 64512   ;;  %vm392_vm3 = vcmask 1041409  }
  0x48   :  { %v768_v7 = vpack.c.bf16 %v94_v4, %v93_v2  ;;  %751 = vmatprep.mubr.msk.f32.mxu0 %vm102_vm0, %v1047_v5  ;;  %v1055_v9 = vld [vmem:[#allocation6] sm:$0xff]  ;;  %v722_v10 = vld [vmem:[%s1223_s5] ss:$0 sm:$0xff]  ;;  %v1062_v14 = vld [vmem:[#allocation6 + $0x8] sm:$0xff]  ;;  %786 = vset.pattern.permute.xlu1 %v936_v16  ;;  %v346_v44 = vshrl.u32 %v340_v42, 7  ;;  %v341_v55 = vand.u32 127, %v340_v42 }
  0x49   :  { %765 = vmatprep.subr.bf16.mxu0 %v764_v3  ;;  %755 = vmatpush3.xpose.msk.msra.mxu1 %vm102_vm0, %v1055_v9  ;;  %v336_v17 = vld [vmem:[%s1220_s2] sm:$0x1]  ;;  %v337_v18 = vld [vmem:[%s1220_s2 + $0x1] sm:$0x1]  ;;  %v937_v46 = vmov 1966171168  }
  0x4a   :  { %767 = vmatpush3.bf16.msra.mxu0 %v764_v3  ;;  %759 = vmatprep.subr.mxu1 %v934_v6  ;;  %v339_v19 = vld [vmem:[%s1221_s3 + $0x1] sm:$0x1]  ;;  %v338_v41 = vld [vmem:[%s1221_s3] sm:$0x1]  ;;  %v347_v45 = vsub.s32 0, %v346_v44  ;;  %v358_v47 = vunpack.c.l.s4 %v937_v46  ;;  %v1081_v57 = vsub.s32 %v341_v55, %v346_v44  ;;  %vm445_vm5 = vcmask 58368  }
  0x4b   :  { %769 = vmatprep.subr.bf16.mxu0 %v768_v7  ;;  %787 = vset.pattern.permute.xlu0 %v936_v16  ;;  %s1138_s15 = sld [smem:[#allocation9 + $0x2]]  ;;  %s1140_s16 = sld [smem:[#allocation9]] }
  0x4c   :  { %343 = vperm.xlu1 %786, %v336_v17   ;;  %v359_v50 = vunpack.c.0.s8 %v358_v47  ;;  %s938_s17 = smov [#allocation10]  }
  0x4d   :  { %s692_s18 = sshll.u32 %s938_s17, 4  ;;  %s1159_s18 = int_to_ptr.vmem [resolvable:$true] %s692_s18 }
  0x4e   :  { %771 = vmatpush3.bf16.msra.mxu0 %v768_v7  ;;  %v362_v52 = vsub.s32 %v359_v50, %v346_v44  ;;  %s874_s19 = scalar_lea.vmem %s1159_s18, 96  ;;  %p879_p2 = scmp.lt.s32.totalorder %s1159_s18, %s1159_s18 }
  0x4f   :  { %p875_p1 = scmp.ne.s32.totalorder %s1159_s18, %s874_s19  ;;  %p880_p3 = scmp.lt.s32.totalorder %s874_s19, %s874_s19 }
  0x50   :  { %350 = vperm.xlu1 %786, %v337_v18  }
  0x51   :  { %752 = vmatmul.mubr.msk.f32.vlgmr.msra.gmra.mrb[0].mxu0 %vm102_vm0, %v1051_v8  ;;  %p881_p4 = por %p880_p3, %p879_p2 }
  0x53   :  { %p882_p5 = pnand %p881_p4, %p875_p1 }
  0x54   :  { %404 = vperm.xlu1 %786, %v339_v19  }
  0xcb   :  { %v344_v43 = vpop.permute.xlu1 %343 }
  0xcc   :  { %v348_v49 = vrot.slane %v344_v43, %v347_v45 }
  0xcf   :  { %v351_v48 = vpop.permute.xlu1 %350 }
  0xd0   :  { %v355_v51 = vrot.slane %v351_v48, %v347_v45 }
  0xd2   :  { %v356_v53 = vcombine.low %v348_v49, %v355_v51  ;;  %v601_v51 = vmul.f32 %v1062_v14, %v1062_v14 }
  0xd3   :  { %v405_v1 = vpop.permute.xlu1 %404 }
  0xd4   :  { %v363_v54 = vrot.slane %v356_v53, %v362_v52 }
  0xd6   :  { %v370_v59 = vrot.slane %v363_v54, %v362_v52 }
  0xd8   :  { %vm371_vm4 = vcmp.lt.s32.totalorder %v341_v55, %v370_v59 }
 0x124   :  { %v753_v11 = vpop.f32.mrb[0].mxu0 }
 0x125   :  { %v175_v12 = vpop.f32.mrb[1].mxu0  ;;  %v181_v15 = vadd.f32 %v753_v11, %v722_v10 }
 0x126   :  { %v176_v13 = vadd.f32 %v722_v10, %v175_v12  ;;  %v468_v10 = vld [vmem:[%s1224_s6] sm:$0xf]  ;;  %s1136_s6 = sld [smem:[#allocation9 + $0x1]] }
 0x128   :  { %757 = vmatmul.mubr.msk.f32.vlgmr.msra.gmra.mrb[0].mxu1 %vm102_vm0, %v176_v13  ;;  %v475_v13 = vrot.slane %v468_v10, %v347_v45 }
 0x129   :  { %760 = vmatpush3.xpose.msk.msra.mxu1 %vm102_vm0, %v1062_v14  ;;  %761 = vmatprep.mubr.msk.f32.mxu1 %vm935_vm1, %v934_v6  ;;  %v409_v6 = vrot.slane %v405_v1, %v347_v45 }
 0x12a   :  { %v476_v16 = vmul.f32 %v475_v13, %v1047_v5 }
 0x12c   :  { %762 = vmatmul.mubr.msk.f32.vlgmr.msra.gmra.mrb[2].mxu1 %vm102_vm0, %v181_v15  ;;  %v478_v19 = vsel %vm102_vm0, %v476_v16, 0.0 }
 0x1fb   :  { %v256_v20 = vpop.f32.mrb[0].mxu1 }
 0x1fc   :  { %v373_v21 = vsel %vm372_vm2, %v256_v20, 0.0  ;;  %v758_v22 = vpop.f32.mrb[1].mxu1  ;;  %v477_v20 = vmul.f32 %v475_v13, %v1051_v8 }
 0x1fd   :  { %v426_v23 = vrot.slane %v373_v21, 4  ;;  %374 = vadd.xlane.f32.xlu0 %v373_v21  ;;  %v584_v22 = vmul.f32 %v475_v13, %v1055_v9 }
 0x1ff   :  { %v427_v24 = vadd.f32 %v426_v23, %v373_v21  ;;  %v332_v25 = vpop.f32.mrb[2].mxu1  ;;  %v500_v21 = vsub.s32 2, %v346_v44  ;;  %v481_v23 = vsel %vm102_vm0, %v477_v20, 0.0 }
 0x200   :  { %v376_v26 = vsel %vm372_vm2, %v332_v25, 0.0  ;;  %v763_v27 = vpop.f32.mrb[3].mxu1 }
 0x201   :  { %v428_v28 = vrot.slane %v427_v24, 2  ;;  %v432_v29 = vrot.slane %v376_v26, 4  ;;  %377 = vadd.xlane.f32.xlu0 %v376_v26  ;;  %v501_v25 = vrot.slane %v468_v10, %v500_v21 }
 0x203   :  { %v429_v30 = vadd.f32 %v428_v28, %v427_v24  ;;  %v433_v31 = vadd.f32 %v432_v29, %v376_v26  ;;  %v497_v24 = vmul.f32 %v1051_v8, %v1051_v8  ;;  %v486_v26 = vsub.s32 1, %v346_v44 }
 0x204   :  { %v512_v28 = vsub.s32 3, %v346_v44  ;;  %v586_v29 = vsel %vm102_vm0, %v584_v22, 0.0 }
 0x205   :  { %v430_v32 = vrot.slane %v429_v30, 1  ;;  %v434_v33 = vrot.slane %v433_v31, 2  ;;  %v503_v27 = vmul.f32 %v501_v25, %v497_v24 }
 0x207   :  { %v435_v34 = vadd.f32 %v434_v33, %v433_v31  ;;  %v431_v35 = vadd.f32 %v430_v32, %v429_v30  ;;  %v585_v30 = vmul.f32 %v475_v13, %v1062_v14  ;;  %v507_v31 = vsel %vm102_vm0, %v503_v27, 0.0 }
 0x208   :  { %v487_v32 = vrot.slane %v468_v10, %v486_v26  ;;  %v513_v33 = vrot.slane %v468_v10, %v512_v28 }
 0x209   :  { %v436_v36 = vrot.slane %v435_v34, 1  ;;  %v438_v38 = vmul.f32 0.125, %v431_v35  ;;  %v589_v35 = vsel %vm102_vm0, %v585_v30, 0.0 }
 0x20a   :  { %v514_v44 = vmul.f32 %v513_v33, %v1047_v5  ;;  %v593_v50 = vmul.f32 %v487_v32, %v1062_v14  ;;  %v592_v59 = vmul.f32 %v487_v32, %v1055_v9 }
 0x20b   :  { %v437_v37 = vadd.f32 %v436_v36, %v435_v34  ;;  %v515_v34 = vmul.f32 %v513_v33, %v1051_v8  ;;  %v488_v36 = vmul.f32 %v487_v32, %v1047_v5 }
 0x20d   :  { %v439_v39 = vmul.f32 0.125, %v437_v37  ;;  %v519_v37 = vsel %vm102_vm0, %v515_v34, 0.0 }
 0x20f   :  { %v442_v40 = vsel %vm392_vm3, %v439_v39, %v438_v38  ;;  %v490_v38 = vsel %vm102_vm0, %v488_v36, 0.0  ;;  %v489_v39 = vmul.f32 %v487_v32, %v1051_v8 }
 0x217   :  { %397 = vperm.xlu0 %787, %v338_v41   ;;  %v493_v41 = vsel %vm102_vm0, %v489_v39, 0.0 }
 0x236   :  { %508 = vadd.xlane.f32.xlu0 %v507_v31  ;;  %v564_v31 = vstv %s1136_s6 }
 0x23a   :  { %520 = vadd.xlane.f32.xlu0 %v519_v37 }
 0x28a   :  { %v375_v56 = vpop.xlane.xlu0 %374 }
 0x28b   :  { %v380_v58 = vmul.f32 0.125, %v375_v56 }
 0x28d   :  { %v387_v62 = vrot.slane %v380_v58, %v1081_v57  ;;  %v611_v58 = vmul.f32 %v513_v33, %v1062_v14 }
 0x28e   :  { %v378_v60 = vpop.xlane.xlu0 %377 }
 0x28f   :  { %v381_v61 = vmul.f32 0.125, %v378_v60  ;;  %v600_v60 = vmul.f32 %v1055_v9, %v1055_v9 }
 0x291   :  { %v391_v63 = vrot.slane %v381_v61, %v1081_v57  ;;  %v615_v61 = vsel %vm102_vm0, %v611_v58, 0.0  ;;  %v602_v1 = vmul.f32 %v600_v60, %v501_v25 }
 0x293   :  { %v393_v0 = vsel %vm392_vm3, %v391_v63, %v387_v62  ;;  %v604_v14 = vsel %vm102_vm0, %v602_v1, 0.0 }
 0x294   :  { %v395_v2 = vsel %vm371_vm4, %v393_v0, -inf  ;;  %v594_v0 = vsel %vm102_vm0, %v592_v59, 0.0 }
 0x295   :  { %v446_v3 = vsel %vm445_vm5, %v395_v2, -inf }
 0x296   :  { %447 = vmax.xlane.f32.xlu1 %v446_v3  ;;  %v398_v4 = vpop.permute.xlu0 %397 }
 0x297   :  { %v402_v7 = vrot.slane %v398_v4, %v347_v45  ;;  %v516_v45 = vsel %vm102_vm0, %v514_v44, 0.0 }
 0x299   :  { %v410_v11 = vcombine.low %v402_v7, %v409_v6 }
 0x29b   :  { %v417_v12 = vrot.slane %v410_v11, %v362_v52 }
 0x29d   :  { %v424_v15 = vrot.slane %v417_v12, %v362_v52 }
 0x29f   :  { %vm425_vm6 = vcmp.lt.s32.totalorder %v341_v55, %v424_v15  ;;  %v603_v55 = vmul.f32 %v601_v51, %v501_v25 }
 0x2a0   :  { %v444_v17 = vsel %vm425_vm6, %v442_v40, -inf  ;;  %v496_v40 = vmul.f32 %v1047_v5, %v1047_v5  ;;  %v597_v5 = vsel %vm102_vm0, %v593_v50, 0.0 }
 0x2a1   :  { %v457_v18 = vsel %vm445_vm5, %v444_v17, -inf  ;;  %v607_v56 = vsel %vm102_vm0, %v603_v55, 0.0 }
 0x2a2   :  { %458 = vmax.xlane.f32.xlu1 %v457_v18  ;;  %v502_v42 = vmul.f32 %v501_v25, %v496_v40  ;;  %v548_v40 = vstv %s1140_s16 }
 0x2a4   :  { %v504_v43 = vsel %vm102_vm0, %v502_v42, 0.0 }
 0x2a6   :  { %479 = vadd.xlane.f32.xlu1 %v478_v19 }
 0x2aa   :  { %482 = vadd.xlane.f32.xlu1 %v481_v23 }
 0x2ae   :  { %587 = vadd.xlane.f32.xlu1 %v586_v29 }
 0x2b2   :  { %590 = vadd.xlane.f32.xlu1 %v589_v35 }
 0x2b6   :  { %491 = vadd.xlane.f32.xlu1 %v490_v38  ;;  %v581_v38 = vstv %s1138_s15 }
 0x2ba   :  { %494 = vadd.xlane.f32.xlu1 %v493_v41 }
 0x2be   :  { %505 = vadd.xlane.f32.xlu1 %v504_v43 }
 0x2c2   :  { %517 = vadd.xlane.f32.xlu1 %v516_v45 }
 0x2c3   :  { %v509_v11 = vpop.xlane.xlu0 %508 }
 0x2c4   :  { %v560_v21 = vrot.slane %v509_v11, %v1081_v57 }
 0x2c7   :  { %v521_v13 = vpop.xlane.xlu0 %520 }
 0x2c8   :  { %v577_v25 = vrot.slane %v521_v13, %v1081_v57 }
 0x323   :  { %v448_v46 = vpop.xlane.xlu1 %447 }
 0x324   :  { %v449_v47 = vsub.f32 %v395_v2, %v448_v46  ;;  %v610_v2 = vmul.f32 %v513_v33, %v1055_v9 }
 0x326   :  { %v450_v48 = vmul.f32 1.442695, %v449_v47  ;;  %v612_v3 = vsel %vm102_vm0, %v610_v2, 0.0 }
 0x328   :  { %788 = vpow2.f32 %v450_v48 }
 0x32f   :  { %v459_v8 = vpop.xlane.xlu1 %458 }
 0x330   :  { %v460_v49 = vsub.f32 %v444_v17, %v459_v8 }
 0x332   :  { %v789_v52 = vpop.eup %788  ;;  %v461_v53 = vmul.f32 1.442695, %v460_v49 }
 0x333   :  { %v452_v54 = vsel %vm445_vm5, %v789_v52, 0.0  ;;  %v480_v4 = vpop.xlane.xlu1 %479 }
 0x334   :  { %790 = vpow2.f32 %v461_v53  ;;  %453 = vadd.xlane.f32.xlu0 %v452_v54  ;;  %v527_v19 = vrot.slane %v480_v4, %v1081_v57 }
 0x337   :  { %v483_v6 = vpop.xlane.xlu1 %482 }
 0x338   :  { %598 = vadd.xlane.f32.xlu0 %v597_v5  ;;  %v531_v20 = vrot.slane %v483_v6, %v1081_v57 }
 0x33a   :  { %v532_v30 = vsel %vm392_vm3, %v531_v20, %v527_v19 }
 0x33b   :  { %v1132_v7 = vpop.xlane.xlu1 %587 }
 0x33c   :  { %608 = vadd.xlane.f32.xlu0 %v607_v56  ;;  %v623_v51 = vrot.slane %v1132_v7, %v1081_v57 }
 0x33e   :  { %v1124_v62 = vpop.eup %790 }
 0x33f   :  { %v463_v63 = vsel %vm445_vm5, %v1124_v62, 0.0  ;;  %v1134_v10 = vpop.xlane.xlu1 %590 }
 0x340   :  { %464 = vadd.xlane.f32.xlu1 %v463_v63  ;;  %616 = vadd.xlane.f32.xlu0 %v615_v61 }
 0x343   :  { %v492_v12 = vpop.xlane.xlu1 %491 }
 0x344   :  { %595 = vadd.xlane.f32.xlu1 %v594_v0  ;;  %v540_v24 = vrot.slane %v492_v12, %v1081_v57 }
 0x347   :  { %v495_v15 = vpop.xlane.xlu1 %494 }
 0x348   :  { %605 = vadd.xlane.f32.xlu1 %v604_v14  ;;  %v544_v26 = vrot.slane %v495_v15, %v1081_v57 }
 0x34a   :  { %v545_v37 = vsel %vm392_vm3, %v544_v26, %v540_v24 }
 0x34b   :  { %v506_v17 = vpop.xlane.xlu1 %505 }
 0x34c   :  { %613 = vadd.xlane.f32.xlu1 %v612_v3  ;;  %v556_v22 = vrot.slane %v506_v17, %v1081_v57 }
 0x34e   :  { %v561_v32 = vsel %vm392_vm3, %v560_v21, %v556_v22 }
 0x34f   :  { %v518_v9 = vpop.xlane.xlu1 %517 }
 0x350   :  { %v573_v27 = vrot.slane %v518_v9, %v1081_v57 }
 0x352   :  { %v578_v39 = vsel %vm392_vm3, %v577_v25, %v573_v27 }
 0x3c1   :  { %v454_v16 = vpop.xlane.xlu0 %453 }
 0x3c2   :  { %792 = vrcp.f32 %v454_v16 }
 0x3c5   :  { %v1142_v18 = vpop.xlane.xlu0 %598 }
 0x3c6   :  { %v640_v55 = vrot.slane %v1142_v18, %v1081_v57 }
 0x3c9   :  { %v609_v36 = vpop.xlane.xlu0 %608 }
 0x3ca   :  { %v655_v53 = vrot.slane %v609_v36, %v1081_v57 }
 0x3cc   :  { %v793_v23 = vpop.eup %792 }
 0x3cd   :  { %v456_v28 = vmul.f32 %v793_v23, %v789_v52  ;;  %v465_v29 = vpop.xlane.xlu1 %464  ;;  %v617_v49 = vpop.xlane.xlu0 %616  ;;  %v627_v52 = vrot.slane %v1134_v10, %v1081_v57 }
 0x3ce   :  { %794 = vrcp.f32 %v465_v29  ;;  %v671_v58 = vrot.slane %v617_v49, %v1081_v57 }
 0x3cf   :  { %v563_v33 = vmul.f32 %v561_v32, %v456_v28  ;;  %v731_v34 = vadd.f32 -1.0, %v456_v28  ;;  %v534_v35 = vmul.f32 %v532_v30, %v456_v28 }
 0x3d1   :  { %v565_v41 = vadd.f32 %v564_v31, %v563_v33  ;;  %v580_v42 = vmul.f32 %v731_v34, %v578_v39  ;;  %v547_v43 = vadd.f32 %v545_v37, %v534_v35  ;;  %v596_v44 = vpop.xlane.xlu1 %595 }
 0x3d2   :  { %v636_v56 = vrot.slane %v596_v44, %v1081_v57 }
 0x3d3   :  { %v566_v45 = vmax.f32 %v565_v41, 0.0  ;;  %v582_v46 = vadd.f32 %v581_v38, %v580_v42  ;;  %v549_v47 = vadd.f32 %v548_v40, %v547_v43 }
 0x3d5   :  { %679 = vst.msk [vmem:[#allocation10 + $0x2] sm:$0x3] %vm445_vm5, %v566_v45  ;;  %v583_v48 = vmax.f32 %v582_v46, 0.0  ;;  %v606_v8 = vpop.xlane.xlu1 %605  ;;  %v550_v50 = vmax.f32 %v549_v47, 0.0 }
 0x3d6   :  { %v651_v54 = vrot.slane %v606_v8, %v1081_v57 }
 0x3d7   :  { %681 = vst.msk [vmem:[#allocation10 + $0x4] sm:$0x3] %vm445_vm5, %v583_v48  ;;  %677 = vst.msk [vmem:[#allocation10] sm:$0x3] %vm445_vm5, %v550_v50 }
 0x3d8   :  { %v795_v5 = vpop.eup %794 }
 0x3d9   :  { %885 = shalt.err (!%p882_p5)
}
 0x3da   :  { %s886_s24 = scalar_lea.hbm %s1226_s8, 96 }
 0x3db   :  { %p887_p6 = scmp.ne.s32.totalorder %s1226_s8, %s886_s24  ;;  %p890_p7 = scmp.lt.u32.totalorder %s886_s24, %s1226_s8 }
 0x3dd   :  { %p892_p8 = pnand %p890_p7, %p887_p6 }
 0x3df   :  { %895 = shalt.err (!%p892_p8)
}
 0x3e0   :  { %s939_s7 = smov 32   ;;  %s940_s12 = smov 2   ;;  %v467_v59 = vmul.f32 %v795_v5, %v1124_v62  ;;  %v614_v60 = vpop.xlane.xlu1 %613  ;;  %v628_v61 = vsel %vm392_vm3, %v627_v52, %v623_v51  ;;  %v656_v63 = vsel %vm392_vm3, %v655_v53, %v651_v54  ;;  %v641_v3 = vsel %vm392_vm3, %v640_v55, %v636_v56 }
 0x3e1   :  { %698 = dma.vmem_to_hbm [thread:$0]  %s1159_s18, 96, %s1226_s8, [#allocation4], %s939_s7, %s939_s7, %s940_s12   ;;  %v667_v0 = vrot.slane %v614_v60, %v1081_v57 }
 0x3e2   :  { %v630_v1 = vmul.f32 %v628_v61, %v467_v59  ;;  %v658_v14 = vmul.f32 %v656_v63, %v467_v59  ;;  %v732_v2 = vadd.f32 -1.0, %v467_v59  ;;  %s941_s8 = smov [#allocation11]  }
 0x3e3   :  { %v672_v4 = vsel %vm392_vm3, %v671_v58, %v667_v0  ;;  %s704_s4 = sshll.u32 %s941_s8, 4  ;;  %s705_s4 = int_to_ptr.vmem [resolvable:$true] %s704_s4 }
 0x3e4   :  { %v643_v6 = vadd.f32 %v641_v3, %v630_v1  ;;  %v659_v7 = vadd.f32 %v658_v14, %v564_v31  ;;  %v674_v10 = vmul.f32 %v732_v2, %v672_v4  ;;  %s896_s21 = scalar_lea.vmem %s705_s4, 96  ;;  %p901_p10 = scmp.lt.s32.totalorder %s705_s4, %s705_s4 }
 0x3e5   :  { %p897_p9 = scmp.ne.s32.totalorder %s705_s4, %s896_s21  ;;  %p902_p11 = scmp.lt.s32.totalorder %s896_s21, %s896_s21 }
 0x3e6   :  { %v644_v62 = vadd.f32 %v643_v6, %v548_v40  ;;  %v660_v11 = vmax.f32 %v659_v7, 0.0  ;;  %v675_v12 = vadd.f32 %v674_v10, %v581_v38 }
 0x3e7   :  { %p903_p12 = por %p902_p11, %p901_p10 }
 0x3e8   :  { %v645_v13 = vmax.f32 %v644_v62, 0.0  ;;  %684 = vst.msk [vmem:[#allocation11 + $0x2] sm:$0x3] %vm445_vm5, %v660_v11  ;;  %v676_v15 = vmax.f32 %v675_v12, 0.0 }
 0x3e9   :  { %p904_p13 = pnand %p903_p12, %p897_p9 }
 0x3ea   :  { %682 = vst.msk [vmem:[#allocation11] sm:$0x3] %vm445_vm5, %v645_v13  ;;  %686 = vst.msk [vmem:[#allocation11 + $0x4] sm:$0x3] %vm445_vm5, %v676_v15 }
 0x3eb   :  { %907 = shalt.err (!%p904_p13)
}
 0x3ec   :  { %s908_s5 = scalar_lea.hbm %s1227_s9, 96 }
 0x3ed   :  { %p909_p0 = scmp.ne.s32.totalorder %s1227_s9, %s908_s5  ;;  %p912_p1 = scmp.lt.u32.totalorder %s908_s5, %s1227_s9 }
 0x3ef   :  { %p914_p2 = pnand %p912_p1, %p909_p0 }
 0x3f1   :  { %917 = shalt.err (!%p914_p2)
}
 0x3f2   :  { %710 = dma.vmem_to_hbm [thread:$0]  %s705_s4, 96, %s1227_s9, [#allocation12], %s939_s7, %s939_s7, %s940_s12  }
 0x3f3   :  { %924 = dma.done.wait [#allocation4], 96  }
 0x3f4   :  { %925 = vsyncadd [#allocation4], 4294967200 }
 0x3f5   :  { %926 = dma.done.wait [#allocation12], 96  }
 0x3f6   :  { %927 = vsyncadd [#allocation12], 4294967200 }
 0x3f7   :  { %717 = vsyncpa [#allocation3], 1 }
 0x3f8   :  { %718 = vsyncpa [#allocation7], 1 }
 0x3f9   :  { %719 = vsyncpa [#allocation4], 1 }
 0x3fa   :  { %720 = vsyncpa [#allocation12], 1 }
 0x3fb   :  { %721 = vsyncpa [#allocation5], 1 }

</bundles_post_ra>
